<compile_context>
chip_gen: v6e
topology: v6e:2x2x1
jax: 0.10.0
libtpu: 0.0.40
codegen_flags: <defaults>
</compile_context>

<pallas_src>
import jax
import jax.numpy as jnp
from jax.experimental import pallas as pl
from jax.experimental.pallas import tpu as pltpu


# ---------------------------------------------------------------------------
# Kernel body: pure VPU elementwise |x1 - x2| on the current block.
# ---------------------------------------------------------------------------
def _abs_diff_kernel(x1_ref, x2_ref, o_ref):
    o_ref[...] = jnp.abs(x1_ref[...] - x2_ref[...])


_TARGET_BLOCK_BYTES = 4 * 1024 * 1024     # ~4 MiB (padded) per input block
_MIN_SPLIT_BYTES = 2 * 1024 * 1024        # force >=2 grid steps above this
_VMEM_LIMIT_BYTES = 48 * 1024 * 1024      # 3 arrays x 2 bufs x 4 MiB << 48 MiB
_SMALL_INPUT_ELEMS = 1 << 20              # below this, plain XLA is optimal


def _sublane_multiple(dtype) -> int:
    # 8 for 4-byte, 16 for 2-byte, 32 for 1-byte dtypes (sub-32-bit packs
    # along sublanes).
    itemsize = jnp.dtype(dtype).itemsize
    return max(8, 32 // itemsize)


def _choose_tile(extent: int, unit_bytes: int, align: int) -> int:
    """Tile size along the leading/blocked axis.

    * multiple of `align` (or the full extent),
    * ~_TARGET_BLOCK_BYTES of layout-padded VMEM per block,
    * >=2 grid steps whenever the slab is big enough to benefit from both
      v7x TensorCores (dimension_semantics=("parallel",)).
    """
    target = max(align, (_TARGET_BLOCK_BYTES // max(unit_bytes, 1)) // align * align)
    total_bytes = extent * unit_bytes
    if total_bytes >= _MIN_SPLIT_BYTES and extent > align:
        half = -(-extent // 2)              # ceil(extent / 2)
        half = -(-half // align) * align    # round up to `align` multiple
        target = min(target, half)
    return extent if target >= extent else target


def _compiler_params():
    return pltpu.CompilerParams(
        dimension_semantics=("parallel",),      # megacore sharding on v7x
        vmem_limit_bytes=_VMEM_LIMIT_BYTES,
    )


def _pallas_abs_diff_2d(x1: jax.Array, x2: jax.Array) -> jax.Array:
    """abs(x1-x2) on a 2-D array, gridded over rows, last dim at full extent."""
    rows, w = x1.shape
    itemsize = jnp.dtype(x1.dtype).itemsize
    sublane = _sublane_multiple(x1.dtype)
    pad_w = -(-w // 128) * 128                      # lane-padded VMEM width
    unit_bytes = pad_w * itemsize                   # padded bytes per row
    tile_r = _choose_tile(rows, unit_bytes, sublane)
    grid = (pl.cdiv(rows, tile_r),)                 # masked tail block if ragged

    spec = pl.BlockSpec((tile_r, w), lambda i: (i, 0))
    return pl.pallas_call(
        _abs_diff_kernel,
        out_shape=jax.ShapeDtypeStruct((rows, w), x1.dtype),
        grid=grid,
        in_specs=[spec, spec],
        out_specs=spec,
        compiler_params=_compiler_params(),
    )(x1, x2)


def _pallas_abs_diff_3d(x1: jax.Array, x2: jax.Array) -> jax.Array:
    """abs(x1-x2) on (lead, H, W): grid over `lead`, (H, W) at full extent.

    Keeping the two layout-tiled minor dims untouched means no relayout copy
    is ever inserted around the custom call, even for ragged H / W.
    """
    lead, h, w = x1.shape
    itemsize = jnp.dtype(x1.dtype).itemsize
    sublane = _sublane_multiple(x1.dtype)
    pad_h = -(-h // sublane) * sublane
    pad_w = -(-w // 128) * 128
    unit_bytes = pad_h * pad_w * itemsize           # padded VMEM bytes / lead unit
    tile_l = _choose_tile(lead, unit_bytes, 1)      # leading dim: no alignment req.
    grid = (pl.cdiv(lead, tile_l),)

    spec = pl.BlockSpec((tile_l, h, w), lambda i: (i, 0, 0))
    return pl.pallas_call(
        _abs_diff_kernel,
        out_shape=jax.ShapeDtypeStruct((lead, h, w), x1.dtype),
        grid=grid,
        in_specs=[spec, spec],
        out_specs=spec,
        compiler_params=_compiler_params(),
    )(x1, x2)


def block_forward(x1: jax.Array, x2: jax.Array, *, use_pallas=None) -> jax.Array:
    """Equivalent of Block.forward(x1, x2) = abs(x1 - x2)."""
    assert x1.shape == x2.shape and x1.dtype == x2.dtype

    if use_pallas is None:
        use_pallas = x1.size >= _SMALL_INPUT_ELEMS
    if (not use_pallas) or x1.ndim < 2 or x1.size == 0:
        # XLA's fused elementwise already hits the HBM roofline for small
        # inputs with zero relayout and no pallas_call dispatch overhead.
        return jnp.abs(x1 - x2)

    if x1.ndim == 2:
        return _pallas_abs_diff_2d(x1, x2)

    # Collapse only the dims ABOVE the two layout-tiled minor dims (free,
    # no relayout copy); keep (H, W) at full extent inside the kernel.
    h, w = x1.shape[-2], x1.shape[-1]
    lead = x1.size // (h * w)
    shp3 = (lead, h, w)
    out = _pallas_abs_diff_3d(x1.reshape(shp3), x2.reshape(shp3))
    return out.reshape(x1.shape)


def init_block_params(key, dim: int, dim_out: int):
    """Deterministic init of the (unused-in-forward) Conv2d(dim, dim_out, 3) params."""
    kw, kb = jax.random.split(key)
    fan_in = dim * 3 * 3
    bound = 1.0 / jnp.sqrt(fan_in)
    weight = jax.random.uniform(kw, (dim_out, dim, 3, 3), jnp.float32, -bound, bound)
    bias = jax.random.uniform(kb, (dim_out,), jnp.float32, -bound, bound)
    # TODO(synk): the Conv2d+ReLU block is dead code in Block.forward; params are
    # created only for parameter-shape fidelity and never applied.
    return {"conv_weight": weight, "conv_bias": bias}


if __name__ == "__main__":
    key = jax.random.PRNGKey(0)
    ks = jax.random.split(key, 12)

    _ = init_block_params(ks[10], dim=4, dim_out=8)  # deterministic, unused in forward

    def check(x1, x2, **kw):
        out = jax.block_until_ready(block_forward(x1, x2, **kw))
        ref = jnp.abs(x1 - x2)
        assert out.shape == ref.shape and out.dtype == ref.dtype
        assert bool(jnp.allclose(out, ref)), f"mismatch for shape {x1.shape} {x1.dtype}"

    # 1) Module-spec small NCHW shape: auto path (XLA fused) and forced Pallas path.
    x1a = jax.random.normal(ks[0], (2, 4, 16, 16), jnp.float32)
    x2a = jax.random.normal(ks[1], (2, 4, 16, 16), jnp.float32)
    check(x1a, x2a)                      # auto -> XLA fast path
    check(x1a, x2a, use_pallas=True)     # forced Pallas (narrow W, masked lanes)

    # 2) Lane-dense NCHW (W % 128 == 0): forced >=2 parallel grid steps (megacore).
    x1b = jax.random.normal(ks[2], (4, 32, 56, 128), jnp.float32)
    x2b = jax.random.normal(ks[3], (4, 32, 56, 128), jnp.float32)
    check(x1b, x2b, use_pallas=True)

    # 3) Ragged spatial dims (no pad / slice / relayout copies on this path).
    x1c = jax.random.normal(ks[4], (1, 3, 150, 150), jnp.float32)
    x2c = jax.random.normal(ks[5], (1, 3, 150, 150), jnp.float32)
    check(x1c, x2c, use_pallas=True)

    # 4) bf16 (sublane packing multiple = 16).
    x1d = jax.random.normal(ks[6], (2, 16, 64, 128), jnp.bfloat16)
    x2d = jax.random.normal(ks[7], (2, 16, 64, 128), jnp.bfloat16)
    check(x1d, x2d, use_pallas=True)

    # 5) 2-D input with a masked tail block on the row axis.
    x1e = jax.random.normal(ks[8], (3000, 256), jnp.float32)
    x2e = jax.random.normal(ks[9], (3000, 256), jnp.float32)
    check(x1e, x2e, use_pallas=True)

    print("KERNEL_OK")
</pallas_src>

<mosaic_0001>
module attributes {stable_mosaic.version = 11 : i64} {
  func.func @_abs_diff_kernel(%arg0: i32, %arg1: memref<8x16x16xf32, #tpu.memory_space<vmem>>, %arg2: memref<8x16x16xf32, #tpu.memory_space<vmem>>, %arg3: memref<8x16x16xf32, #tpu.memory_space<vmem>>) attributes {dimension_semantics = [#tpu.dimension_semantics<parallel>], iteration_bounds = array<i64: 1>, scalar_prefetch = 0 : i64, scratch_operands = 0 : i64, tpu.core_type = #tpu.core_type<tc>, window_params = [{transform_indices = @transform_0, window_bounds = array<i64: 8, 16, 16>}, {transform_indices = @transform_1, window_bounds = array<i64: 8, 16, 16>}, {transform_indices = @transform_2, window_bounds = array<i64: 8, 16, 16>}]} {
    %c0 = arith.constant 0 : index
    %c0_0 = arith.constant 0 : index
    %c0_1 = arith.constant 0 : index
    %0 = vector.load %arg1[%c0, %c0_0, %c0_1] : memref<8x16x16xf32, #tpu.memory_space<vmem>>, vector<8x16x16xf32>
    %c0_2 = arith.constant 0 : index
    %c0_3 = arith.constant 0 : index
    %c0_4 = arith.constant 0 : index
    %1 = vector.load %arg2[%c0_2, %c0_3, %c0_4] : memref<8x16x16xf32, #tpu.memory_space<vmem>>, vector<8x16x16xf32>
    %2 = arith.subf %0, %1 : vector<8x16x16xf32>
    %3 = math.absf %2 : vector<8x16x16xf32>
    %c0_5 = arith.constant 0 : index
    %c0_6 = arith.constant 0 : index
    %c0_7 = arith.constant 0 : index
    %4 = vector.load %arg3[%c0_5, %c0_6, %c0_7] : memref<8x16x16xf32, #tpu.memory_space<vmem>>, vector<8x16x16xf32>
    tpu.vector_store %arg3[%c0_5, %c0_6, %c0_7], %3 {strides = array<i32>} : memref<8x16x16xf32, #tpu.memory_space<vmem>>, vector<8x16x16xf32>,
    return
  }
  func.func @transform_0(%arg0: i32) -> (i32, i32, i32) {
    %c0_i32 = arith.constant 0 : i32
    %c0_i32_0 = arith.constant 0 : i32
    %c0_i32_1 = arith.constant 0 : i32
    return %arg0, %c0_i32, %c0_i32_0 : i32, i32, i32
  }
  func.func @transform_1(%arg0: i32) -> (i32, i32, i32) {
    %c0_i32 = arith.constant 0 : i32
    %c0_i32_0 = arith.constant 0 : i32
    %c0_i32_1 = arith.constant 0 : i32
    return %arg0, %c0_i32, %c0_i32_0 : i32, i32, i32
  }
  func.func @transform_2(%arg0: i32) -> (i32, i32, i32) {
    %c0_i32 = arith.constant 0 : i32
    %c0_i32_0 = arith.constant 0 : i32
    %c0_i32_1 = arith.constant 0 : i32
    return %arg0, %c0_i32, %c0_i32_0 : i32, i32, i32
  }
}

</mosaic_0001>

<bundles_post_ra>
// kernel: tpu_custom_call.1
= control target key start
LH: loop header
LB: loop body
LE: loop exit
PB: predicated region body
PF: predicated region fallthrough
CT: control target
= control target key end

     0   :  { %7 = vsyncpa [#allocation3], 0  ;;  %s264_s0 = inlined_call_operand.hbm [shape: f32[8,16,16], index: 0, kind: input, shape index: {}]   ;;  %s265_s1 = inlined_call_operand.hbm [shape: f32[8,16,16], index: 1, kind: input, shape index: {}]   ;;  %s266_s2 = inlined_call_operand.hbm [shape: f32[8,16,16], index: 2, kind: output, shape index: {}]  }
   0x1   :  { %8 = vsyncpa [#allocation6], 0 }
   0x2   :  { %9 = vsyncpa [#allocation4], 0  ;;  %s210_s9 = smov [#allocation2]  }
   0x3   :  { %s15_s10 = sshll.u32 %s210_s9, 4  ;;  %s16_s10 = int_to_ptr.vmem [resolvable:$true] %s15_s10 }
   0x4   :  { %s152_s11 = scalar_lea.vmem %s16_s10, 2048  ;;  %p157_p1 = scmp.lt.s32.totalorder %s16_s10, %s16_s10 }
   0x5   :  { %p153_p0 = scmp.ne.s32.totalorder %s16_s10, %s152_s11  ;;  %p158_p2 = scmp.lt.s32.totalorder %s152_s11, %s152_s11 }
   0x7   :  { %p159_p3 = por %p158_p2, %p157_p1 }
   0x9   :  { %p160_p4 = pnand %p159_p3, %p153_p0 }
   0xb   :  { %163 = shalt.err (!%p160_p4)
}
   0xc   :  { %s211_s12 = smov 128   ;;  %s212_s13 = smov 8  }
   0xd   :  { %21 = dma.hbm_to_vmem [thread:$0]  %s264_s0, 2048, %s16_s10, [#allocation3], %s211_s12, %s211_s12, %s212_s13  }
   0xe   :  { %s213_s16 = smov [#allocation5]  }
   0xf   :  { %s27_s17 = sshll.u32 %s213_s16, 4  ;;  %s28_s17 = int_to_ptr.vmem [resolvable:$true] %s27_s17 }
  0x10   :  { %s172_s18 = scalar_lea.vmem %s28_s17, 2048  ;;  %p177_p6 = scmp.lt.s32.totalorder %s28_s17, %s28_s17 }
  0x11   :  { %p173_p5 = scmp.ne.s32.totalorder %s28_s17, %s172_s18  ;;  %p178_p7 = scmp.lt.s32.totalorder %s172_s18, %s172_s18 }
  0x13   :  { %p179_p8 = por %p178_p7, %p177_p6 }
  0x15   :  { %p180_p9 = pnand %p179_p8, %p173_p5 }
  0x17   :  { %183 = shalt.err (!%p180_p9)
}
  0x18   :  { %33 = dma.hbm_to_vmem [thread:$0]  %s265_s1, 2048, %s28_s17, [#allocation6], %s211_s12, %s211_s12, %s212_s13  }
  0x19   :  { %204 = dma.done.wait [#allocation3], 2048  }
  0x1a   :  { %205 = vsyncadd [#allocation3], 4294965248 }
  0x1b   :  { %206 = dma.done.wait [#allocation6], 2048  }
  0x1c   :  { %207 = vsyncadd [#allocation6], 4294965248  ;;  %v40_v0 = vld [vmem:[#allocation2] sm:$0xff]  ;;  %v41_v2 = vld [vmem:[#allocation2 + $0x8] sm:$0xff]  ;;  %vm104_vm0 = vcmask 130048   ;;  %s214_s0 = smov [#allocation7]  }
  0x1d   :  { %v56_v1 = vld [vmem:[#allocation5] sm:$0xff]  ;;  %v57_v4 = vld [vmem:[#allocation5 + $0x8] sm:$0xff]  ;;  %v42_v5 = vld [vmem:[#allocation2 + $0x10] sm:$0xff]  ;;  %s126_s1 = sshll.u32 %s214_s0, 4  ;;  %s127_s1 = int_to_ptr.vmem [resolvable:$true] %s126_s1 }
  0x1e   :  { %v72_v3 = vsub.f32 %v40_v0, %v56_v1  ;;  %v58_v6 = vld [vmem:[#allocation5 + $0x10] sm:$0xff]  ;;  %v73_v7 = vsub.f32 %v41_v2, %v57_v4  ;;  %v43_v9 = vld [vmem:[#allocation2 + $0x18] sm:$0xff]  ;;  %v44_v11 = vld [vmem:[#allocation2 + $0x20] sm:$0xff]  ;;  %s184_s21 = scalar_lea.vmem %s127_s1, 2048  ;;  %p189_p11 = scmp.lt.s32.totalorder %s127_s1, %s127_s1 }
  0x1f   :  { %v74_v8 = vsub.f32 %v42_v5, %v58_v6  ;;  %v59_v10 = vld [vmem:[#allocation5 + $0x18] sm:$0xff]  ;;  %v60_v14 = vld [vmem:[#allocation5 + $0x20] sm:$0xff]  ;;  %v45_v15 = vld [vmem:[#allocation2 + $0x28] sm:$0xff]  ;;  %p185_p10 = scmp.ne.s32.totalorder %s127_s1, %s184_s21  ;;  %p190_p12 = scmp.lt.s32.totalorder %s184_s21, %s184_s21 }
  0x20   :  { %v88_v12 = vand.u32 2147483647, %v72_v3  ;;  %v75_v13 = vsub.f32 %v43_v9, %v59_v10  ;;  %v61_v16 = vld [vmem:[#allocation5 + $0x28] sm:$0xff]  ;;  %v89_v17 = vand.u32 2147483647, %v73_v7  ;;  %v76_v19 = vsub.f32 %v44_v11, %v60_v14  ;;  %v46_v21 = vld [vmem:[#allocation2 + $0x30] sm:$0xff] }
  0x21   :  { %v90_v18 = vand.u32 2147483647, %v74_v8  ;;  %v77_v20 = vsub.f32 %v45_v15, %v61_v16  ;;  %v62_v22 = vld [vmem:[#allocation5 + $0x30] sm:$0xff]  ;;  %v47_v25 = vld [vmem:[#allocation2 + $0x38] sm:$0xff]  ;;  %v48_v27 = vld [vmem:[#allocation2 + $0x40] sm:$0xff]  ;;  %p191_p13 = por %p190_p12, %p189_p11 }
  0x22   :  { %105 = vst.msk [vmem:[#allocation7] sm:$0xff] %vm104_vm0, %v88_v12  ;;  %v91_v23 = vand.u32 2147483647, %v75_v13  ;;  %v78_v24 = vsub.f32 %v46_v21, %v62_v22  ;;  %v63_v26 = vld [vmem:[#allocation5 + $0x38] sm:$0xff]  ;;  %106 = vst.msk [vmem:[#allocation7 + $0x8] sm:$0xff] %vm104_vm0, %v89_v17  ;;  %v64_v31 = vld [vmem:[#allocation5 + $0x40] sm:$0xff] }
  0x23   :  { %107 = vst.msk [vmem:[#allocation7 + $0x10] sm:$0xff] %vm104_vm0, %v90_v18  ;;  %v92_v28 = vand.u32 2147483647, %v76_v19  ;;  %v93_v29 = vand.u32 2147483647, %v77_v20  ;;  %v79_v30 = vsub.f32 %v47_v25, %v63_v26  ;;  %v49_v32 = vld [vmem:[#allocation2 + $0x48] sm:$0xff]  ;;  %v80_v34 = vsub.f32 %v48_v27, %v64_v31  ;;  %p192_p0 = pnand %p191_p13, %p185_p10 }
  0x24   :  { %108 = vst.msk [vmem:[#allocation7 + $0x18] sm:$0xff] %vm104_vm0, %v91_v23  ;;  %v94_v33 = vand.u32 2147483647, %v78_v24  ;;  %v65_v35 = vld [vmem:[#allocation5 + $0x48] sm:$0xff]  ;;  %v50_v36 = vld [vmem:[#allocation2 + $0x50] sm:$0xff]  ;;  %v51_v41 = vld [vmem:[#allocation2 + $0x58] sm:$0xff] }
  0x25   :  { %v66_v37 = vld [vmem:[#allocation5 + $0x50] sm:$0xff]  ;;  %109 = vst.msk [vmem:[#allocation7 + $0x20] sm:$0xff] %vm104_vm0, %v92_v28  ;;  %110 = vst.msk [vmem:[#allocation7 + $0x28] sm:$0xff] %vm104_vm0, %v93_v29  ;;  %v95_v38 = vand.u32 2147483647, %v79_v30  ;;  %v81_v39 = vsub.f32 %v49_v32, %v65_v35  ;;  %v67_v42 = vld [vmem:[#allocation5 + $0x58] sm:$0xff] }
  0x26   :  { %v82_v40 = vsub.f32 %v50_v36, %v66_v37  ;;  %v52_v43 = vld [vmem:[#allocation2 + $0x60] sm:$0xff]  ;;  %111 = vst.msk [vmem:[#allocation7 + $0x30] sm:$0xff] %vm104_vm0, %v94_v33  ;;  %v96_v44 = vand.u32 2147483647, %v80_v34  ;;  %v83_v45 = vsub.f32 %v51_v41, %v67_v42  ;;  %v53_v47 = vld [vmem:[#allocation2 + $0x68] sm:$0xff]  ;;  %v54_v53 = vld [vmem:[#allocation2 + $0x70] sm:$0xff] }
  0x27   :  { %v68_v46 = vld [vmem:[#allocation5 + $0x60] sm:$0xff]  ;;  %v69_v48 = vld [vmem:[#allocation5 + $0x68] sm:$0xff]  ;;  %112 = vst.msk [vmem:[#allocation7 + $0x38] sm:$0xff] %vm104_vm0, %v95_v38  ;;  %v97_v49 = vand.u32 2147483647, %v81_v39  ;;  %v70_v54 = vld [vmem:[#allocation5 + $0x70] sm:$0xff] }
  0x28   :  { %v98_v50 = vand.u32 2147483647, %v82_v40  ;;  %v84_v51 = vsub.f32 %v52_v43, %v68_v46  ;;  %v85_v52 = vsub.f32 %v53_v47, %v69_v48  ;;  %113 = vst.msk [vmem:[#allocation7 + $0x40] sm:$0xff] %vm104_vm0, %v96_v44  ;;  %v99_v55 = vand.u32 2147483647, %v83_v45  ;;  %v55_v57 = vld [vmem:[#allocation2 + $0x78] sm:$0xff] }
  0x29   :  { %v86_v56 = vsub.f32 %v54_v53, %v70_v54  ;;  %v71_v58 = vld [vmem:[#allocation5 + $0x78] sm:$0xff]  ;;  %114 = vst.msk [vmem:[#allocation7 + $0x48] sm:$0xff] %vm104_vm0, %v97_v49 }
  0x2a   :  { %115 = vst.msk [vmem:[#allocation7 + $0x50] sm:$0xff] %vm104_vm0, %v98_v50  ;;  %v100_v59 = vand.u32 2147483647, %v84_v51  ;;  %v101_v60 = vand.u32 2147483647, %v85_v52  ;;  %v87_v61 = vsub.f32 %v55_v57, %v71_v58  ;;  %116 = vst.msk [vmem:[#allocation7 + $0x58] sm:$0xff] %vm104_vm0, %v99_v55 }
  0x2b   :  { %v102_v62 = vand.u32 2147483647, %v86_v56 }
  0x2c   :  { %117 = vst.msk [vmem:[#allocation7 + $0x60] sm:$0xff] %vm104_vm0, %v100_v59  ;;  %118 = vst.msk [vmem:[#allocation7 + $0x68] sm:$0xff] %vm104_vm0, %v101_v60  ;;  %v103_v63 = vand.u32 2147483647, %v87_v61 }
  0x2d   :  { %119 = vst.msk [vmem:[#allocation7 + $0x70] sm:$0xff] %vm104_vm0, %v102_v62 }
  0x2e   :  { %120 = vst.msk [vmem:[#allocation7 + $0x78] sm:$0xff] %vm104_vm0, %v103_v63 }
  0x2f   :  { %195 = shalt.err (!%p192_p0)
}
  0x30   :  { %132 = dma.vmem_to_hbm [thread:$0]  %s127_s1, 2048, %s266_s2, [#allocation4], %s211_s12, %s211_s12, %s212_s13  }
  0x31   :  { %208 = dma.done.wait [#allocation4], 2048  }
  0x32   :  { %209 = vsyncadd [#allocation4], 4294965248 }
  0x33   :  { %136 = vsyncpa [#allocation3], 1 }
  0x34   :  { %137 = vsyncpa [#allocation6], 1 }
  0x35   :  { %138 = vsyncpa [#allocation4], 1 }

</bundles_post_ra>
